<compile_context>
chip_gen: v5e
topology: v5e:2x2
jax: 0.10.0
libtpu: 0.0.40
codegen_flags: <defaults>
</compile_context>

<pallas_src>
import functools

import jax
import jax.numpy as jnp
from jax.experimental import pallas as pl
from jax.experimental.pallas import tpu as pltpu


def _look_ahead_mask_kernel(x_ref, o_ref, *, pad_token: int, tq: int, tj: int):
    # x_ref: (1, 1, TJ)      int32 -- tokens for this batch row / j-tile
    # o_ref: (1, 1, TQ, TJ)  bool  -- output mask tile
    i_blk = pl.program_id(1)
    j_blk = pl.program_id(2)
    row0 = i_blk * tq            # first global query (row) index of this tile
    col0 = j_blk * tj            # first global key (col) index of this tile
    out_dtype = o_ref.dtype

    # Tile lies strictly above the diagonal: every col > every row.
    all_above = col0 > row0 + (tq - 1)
    # Tile lies entirely on/below the diagonal: every col <= every row.
    all_below = (col0 + (tj - 1)) <= row0

    @pl.when(all_above)
    def _():
        # Look-ahead part masks everything here: pure store, no iota / tokens.
        o_ref[0, 0, :, :] = jnp.ones((tq, tj), dtype=out_dtype)

    @pl.when(all_below)
    def _():
        # Only the padding mask matters here.
        pad = x_ref[0, 0, :] == jnp.int32(pad_token)                    # (TJ,)
        o_ref[0, 0, :, :] = jnp.broadcast_to(pad[None, :], (tq, tj)).astype(out_dtype)

    @pl.when(jnp.logical_not(jnp.logical_or(all_above, all_below)))
    def _():
        # Diagonal-crossing tile: full look-ahead + padding computation.
        rows = row0 + jax.lax.broadcasted_iota(jnp.int32, (tq, tj), 0)
        cols = col0 + jax.lax.broadcasted_iota(jnp.int32, (tq, tj), 1)
        tri = cols > rows                                               # strict upper triangle
        pad = x_ref[0, 0, :] == jnp.int32(pad_token)                    # (TJ,)
        mask = jnp.logical_or(tri, jnp.broadcast_to(pad[None, :], (tq, tj)))
        o_ref[0, 0, :, :] = mask.astype(out_dtype)


def _pick_row_tile(s: int) -> int:
    # Prefer 32-aligned rows (1-byte elements pack 4 rows per sublane), then 8-aligned.
    for mult in (32, 8):
        t = (min(s, 512) // mult) * mult
        while t >= mult:
            if s % t == 0:
                return t
            t -= mult
    return s  # fall back to full dim (always a legal block dim)


def _pick_col_tile(s: int) -> int:
    # Lane-dense: a large multiple of 128 so stores are unmasked vst.
    t = (min(s, 2048) // 128) * 128
    while t >= 128:
        if s % t == 0:
            return t
        t -= 128
    return s  # fall back to full dim


def _build_mask_call(batch: int, seq: int, pad_token: int, out_dtype, tq: int, tj: int):
    kernel = functools.partial(
        _look_ahead_mask_kernel, pad_token=int(pad_token), tq=tq, tj=tj
    )
    bytes_out = batch * seq * seq * jnp.dtype(out_dtype).itemsize
    bytes_in = batch * seq * 4
    return pl.pallas_call(
        kernel,
        out_shape=jax.ShapeDtypeStruct((batch, 1, seq, seq), out_dtype),
        grid_spec=pltpu.PrefetchScalarGridSpec(
            num_scalar_prefetch=0,
            grid=(batch, seq // tq, seq // tj),
            in_specs=[pl.BlockSpec((1, 1, tj), lambda b, i, j: (b, 0, j))],
            out_specs=pl.BlockSpec((1, 1, tq, tj), lambda b, i, j: (b, 0, i, j)),
        ),
        compiler_params=pltpu.CompilerParams(
            dimension_semantics=("parallel", "parallel", "parallel"),
        ),
        cost_estimate=pl.CostEstimate(
            flops=0, transcendentals=0, bytes_accessed=bytes_out + bytes_in
        ),
    )


def create_look_ahead_mask(x: jax.Array, pad_token: int, *, tile_q=None, tile_j=None) -> jax.Array:
    """x: [B, S] integer tokens. Returns bool mask [B, 1, S, S]."""
    B, S = x.shape
    x3 = x.astype(jnp.int32).reshape(B, 1, S)
    tq = tile_q if tile_q is not None else _pick_row_tile(S)
    tj = tile_j if tile_j is not None else _pick_col_tile(S)
    assert S % tq == 0 and S % tj == 0, (S, tq, tj)

    try:
        # Preferred path: bool output straight from the kernel -> no extra
        # full-array conversion pass over the B*S*S mask.
        return _build_mask_call(B, S, pad_token, jnp.bool_, tq, tj)(x3)
    except Exception:
        # TODO(synk): fallback only if this Mosaic version rejects bool (i1)
        # outputs; uint8 kernel + one conversion pass (correct but slower).
        out_u8 = _build_mask_call(B, S, pad_token, jnp.uint8, tq, tj)(x3)
        return out_u8.astype(jnp.bool_)


def _reference(x: jax.Array, pad_token: int) -> jax.Array:
    S = x.shape[1]
    tri = jnp.triu(jnp.ones((S, S), jnp.uint8), k=1)[None, None]          # [1,1,S,S]
    pad = (x == pad_token).astype(jnp.uint8)[:, None, None, :]            # [B,1,1,S]
    return jnp.maximum(tri, pad).astype(jnp.bool_)


if __name__ == "__main__":
    PAD_TOKEN = 0

    # Small shape matching the module's expected input [batch, seq].
    B, S = 2, 8
    key = jax.random.PRNGKey(0)
    x = jax.random.randint(key, (B, S), 0, 10, dtype=jnp.int32)
    x = x.at[:, -2:].set(PAD_TOKEN)   # guarantee some pad tokens

    mask = jax.block_until_ready(create_look_ahead_mask(x, PAD_TOKEN))
    ref = _reference(x, PAD_TOKEN)
    assert mask.shape == (B, 1, S, S)
    assert mask.dtype == jnp.bool_
    assert bool(jnp.all(mask == ref))

    # Second (still modest) check with explicit tiles to exercise the tiled grid
    # and the above/below-diagonal fast paths.
    B2, S2 = 2, 256
    x2 = jax.random.randint(jax.random.PRNGKey(0), (B2, S2), 0, 5, dtype=jnp.int32)
    mask2 = jax.block_until_ready(
        create_look_ahead_mask(x2, PAD_TOKEN, tile_q=64, tile_j=128)
    )
    assert bool(jnp.all(mask2 == _reference(x2, PAD_TOKEN)))

    print("KERNEL_OK")
</pallas_src>

<mosaic_0001>
module attributes {stable_mosaic.version = 11 : i64} {
  func.func @_look_ahead_mask_kernel(%arg0: i32, %arg1: i32, %arg2: i32, %arg3: memref<1x1x8xi32, #tpu.memory_space<vmem>>, %arg4: memref<1x1x8x8xi32, #tpu.memory_space<vmem>>) attributes {dimension_semantics = [#tpu.dimension_semantics<parallel>, #tpu.dimension_semantics<parallel>, #tpu.dimension_semantics<parallel>], iteration_bounds = array<i64: 2, 1, 1>, scalar_prefetch = 0 : i64, scratch_operands = 0 : i64, tpu.core_type = #tpu.core_type<tc>, window_params = [{transform_indices = @transform_0, window_bounds = array<i64: 1, 1, 8>}, {transform_indices = @transform_1, window_bounds = array<i64: 1, 1, 8, 8>}]} {
    %c8_i32 = arith.constant 8 : i32
    %0 = arith.muli %arg1, %c8_i32 : i32
    %c8_i32_0 = arith.constant 8 : i32
    %1 = arith.muli %arg2, %c8_i32_0 : i32
    %c7_i32 = arith.constant 7 : i32
    %2 = arith.addi %0, %c7_i32 : i32
    %3 = arith.cmpi sgt, %1, %2 : i32
    %c7_i32_1 = arith.constant 7 : i32
    %4 = arith.addi %1, %c7_i32_1 : i32
    %5 = arith.cmpi sle, %4, %0 : i32
    %6 = arith.extui %3 : i1 to i32
    %c0_i32 = arith.constant 0 : i32
    %7 = arith.cmpi ne, %6, %c0_i32 : i32
    scf.if %7 {
      %true_4 = arith.constant true
      %14 = vector.broadcast %true_4 : i1 to vector<8x8xi1>
      %c0 = arith.constant 0 : index
      %c0_5 = arith.constant 0 : index
      %c0_6 = arith.constant 0 : index
      %c0_7 = arith.constant 0 : index
      %15 = vector.load %arg4[%c0, %c0_5, %c0_6, %c0_7] : memref<1x1x8x8xi32, #tpu.memory_space<vmem>>, vector<1x1x8x8xi32>
      %16 = arith.extui %14 : vector<8x8xi1> to vector<8x8xi32>
      %17 = vector.shape_cast %15 : vector<1x1x8x8xi32> to vector<8x8xi32>
      %18 = vector.shape_cast %16 : vector<8x8xi32> to vector<1x1x8x8xi32>
      %cst = arith.constant dense<0> : vector<8x8xi32>
      %19 = arith.cmpi ne, %17, %cst : vector<8x8xi32>
      tpu.vector_store %arg4[%c0, %c0_5, %c0_6, %c0_7], %18 {strides = array<i32>} : memref<1x1x8x8xi32, #tpu.memory_space<vmem>>, vector<1x1x8x8xi32>,
    } else {
    }
    %8 = arith.extui %5 : i1 to i32
    %c0_i32_2 = arith.constant 0 : i32
    %9 = arith.cmpi ne, %8, %c0_i32_2 : i32
    scf.if %9 {
      %c0 = arith.constant 0 : index
      %c0_4 = arith.constant 0 : index
      %c0_5 = arith.constant 0 : index
      %14 = vector.load %arg3[%c0, %c0_4, %c0_5] : memref<1x1x8xi32, #tpu.memory_space<vmem>>, vector<1x1x8xi32>
      %15 = vector.shape_cast %14 : vector<1x1x8xi32> to vector<8xi32>
      %c0_i32_6 = arith.constant 0 : i32
      %16 = vector.broadcast %c0_i32_6 : i32 to vector<8xi32>
      %17 = arith.cmpi eq, %15, %16 : vector<8xi32>
      %18 = vector.shape_cast %17 : vector<8xi1> to vector<1x8xi1>
      %19 = vector.shape_cast %18 : vector<1x8xi1> to vector<1x8xi1>
      %20 = vector.broadcast %19 : vector<1x8xi1> to vector<8x8xi1>
      %c0_7 = arith.constant 0 : index
      %c0_8 = arith.constant 0 : index
      %c0_9 = arith.constant 0 : index
      %c0_10 = arith.constant 0 : index
      %21 = vector.load %arg4[%c0_7, %c0_8, %c0_9, %c0_10] : memref<1x1x8x8xi32, #tpu.memory_space<vmem>>, vector<1x1x8x8xi32>
      %22 = arith.extui %20 : vector<8x8xi1> to vector<8x8xi32>
      %23 = vector.shape_cast %21 : vector<1x1x8x8xi32> to vector<8x8xi32>
      %24 = vector.shape_cast %22 : vector<8x8xi32> to vector<1x1x8x8xi32>
      %cst = arith.constant dense<0> : vector<8x8xi32>
      %25 = arith.cmpi ne, %23, %cst : vector<8x8xi32>
      tpu.vector_store %arg4[%c0_7, %c0_8, %c0_9, %c0_10], %24 {strides = array<i32>} : memref<1x1x8x8xi32, #tpu.memory_space<vmem>>, vector<1x1x8x8xi32>,
    } else {
    }
    %10 = arith.ori %3, %5 : i1
    %true = arith.constant true
    %11 = arith.xori %10, %true : i1
    %12 = arith.extui %11 : i1 to i32
    %c0_i32_3 = arith.constant 0 : i32
    %13 = arith.cmpi ne, %12, %c0_i32_3 : i32
    scf.if %13 {
      %14 = tpu.iota {dimensions = array<i32: 0>} : vector<8x8xi32>
      %15 = vector.broadcast %0 : i32 to vector<8x8xi32>
      %16 = arith.addi %15, %14 : vector<8x8xi32>
      %17 = tpu.iota {dimensions = array<i32: 1>} : vector<8x8xi32>
      %18 = vector.broadcast %1 : i32 to vector<8x8xi32>
      %19 = arith.addi %18, %17 : vector<8x8xi32>
      %20 = arith.cmpi sgt, %19, %16 : vector<8x8xi32>
      %c0 = arith.constant 0 : index
      %c0_4 = arith.constant 0 : index
      %c0_5 = arith.constant 0 : index
      %21 = vector.load %arg3[%c0, %c0_4, %c0_5] : memref<1x1x8xi32, #tpu.memory_space<vmem>>, vector<1x1x8xi32>
      %22 = vector.shape_cast %21 : vector<1x1x8xi32> to vector<8xi32>
      %c0_i32_6 = arith.constant 0 : i32
      %23 = vector.broadcast %c0_i32_6 : i32 to vector<8xi32>
      %24 = arith.cmpi eq, %22, %23 : vector<8xi32>
      %25 = vector.shape_cast %24 : vector<8xi1> to vector<1x8xi1>
      %26 = vector.shape_cast %25 : vector<1x8xi1> to vector<1x8xi1>
      %27 = vector.broadcast %26 : vector<1x8xi1> to vector<8x8xi1>
      %28 = arith.ori %20, %27 : vector<8x8xi1>
      %c0_7 = arith.constant 0 : index
      %c0_8 = arith.constant 0 : index
      %c0_9 = arith.constant 0 : index
      %c0_10 = arith.constant 0 : index
      %29 = vector.load %arg4[%c0_7, %c0_8, %c0_9, %c0_10] : memref<1x1x8x8xi32, #tpu.memory_space<vmem>>, vector<1x1x8x8xi32>
      %30 = arith.extui %28 : vector<8x8xi1> to vector<8x8xi32>
      %31 = vector.shape_cast %29 : vector<1x1x8x8xi32> to vector<8x8xi32>
      %32 = vector.shape_cast %30 : vector<8x8xi32> to vector<1x1x8x8xi32>
      %cst = arith.constant dense<0> : vector<8x8xi32>
      %33 = arith.cmpi ne, %31, %cst : vector<8x8xi32>
      tpu.vector_store %arg4[%c0_7, %c0_8, %c0_9, %c0_10], %32 {strides = array<i32>} : memref<1x1x8x8xi32, #tpu.memory_space<vmem>>, vector<1x1x8x8xi32>,
    } else {
    }
    return
  }
  func.func @transform_0(%arg0: i32, %arg1: i32, %arg2: i32) -> (i32, i32, i32) {
    %c0_i32 = arith.constant 0 : i32
    %c0_i32_0 = arith.constant 0 : i32
    return %arg0, %c0_i32, %arg2 : i32, i32, i32
  }
  func.func @transform_1(%arg0: i32, %arg1: i32, %arg2: i32) -> (i32, i32, i32, i32) {
    %c0_i32 = arith.constant 0 : i32
    %c0_i32_0 = arith.constant 0 : i32
    return %arg0, %c0_i32, %arg1, %arg2 : i32, i32, i32, i32
  }
}

module attributes {stable_mosaic.version = 11 : i64} {
  func.func @_look_ahead_mask_kernel(%arg0: i32, %arg1: i32, %arg2: i32, %arg3: memref<1x1x8xi32, #tpu.memory_space<vmem>>, %arg4: memref<1x1x8x8xi8, #tpu.memory_space<vmem>>) attributes {dimension_semantics = [#tpu.dimension_semantics<parallel>, #tpu.dimension_semantics<parallel>, #tpu.dimension_semantics<parallel>], iteration_bounds = array<i64: 2, 1, 1>, scalar_prefetch = 0 : i64, scratch_operands = 0 : i64, tpu.core_type = #tpu.core_type<tc>, window_params = [{transform_indices = @transform_0, window_bounds = array<i64: 1, 1, 8>}, {transform_indices = @transform_1, window_bounds = array<i64: 1, 1, 8, 8>}]} {
    %c8_i32 = arith.constant 8 : i32
    %0 = arith.muli %arg1, %c8_i32 : i32
    %c8_i32_0 = arith.constant 8 : i32
    %1 = arith.muli %arg2, %c8_i32_0 : i32
    %c7_i32 = arith.constant 7 : i32
    %2 = arith.addi %0, %c7_i32 : i32
    %3 = arith.cmpi sgt, %1, %2 : i32
    %c7_i32_1 = arith.constant 7 : i32
    %4 = arith.addi %1, %c7_i32_1 : i32
    %5 = arith.cmpi sle, %4, %0 : i32
    %6 = arith.extui %3 : i1 to i32
    %c0_i32 = arith.constant 0 : i32
    %7 = arith.cmpi ne, %6, %c0_i32 : i32
    scf.if %7 {
      %c1_i8 = arith.constant 1 : i8
      %14 = vector.broadcast %c1_i8 : i8 to vector<8x8xi8>
      %c0 = arith.constant 0 : index
      %c0_4 = arith.constant 0 : index
      %c0_5 = arith.constant 0 : index
      %c0_6 = arith.constant 0 : index
      %15 = vector.load %arg4[%c0, %c0_4, %c0_5, %c0_6] : memref<1x1x8x8xi8, #tpu.memory_space<vmem>>, vector<1x1x8x8xi8>
      %16 = vector.shape_cast %15 : vector<1x1x8x8xi8> to vector<8x8xi8>
      %17 = vector.shape_cast %14 : vector<8x8xi8> to vector<1x1x8x8xi8>
      tpu.vector_store %arg4[%c0, %c0_4, %c0_5, %c0_6], %17 {strides = array<i32>} : memref<1x1x8x8xi8, #tpu.memory_space<vmem>>, vector<1x1x8x8xi8>,
    } else {
    }
    %8 = arith.extui %5 : i1 to i32
    %c0_i32_2 = arith.constant 0 : i32
    %9 = arith.cmpi ne, %8, %c0_i32_2 : i32
    scf.if %9 {
      %c0 = arith.constant 0 : index
      %c0_4 = arith.constant 0 : index
      %c0_5 = arith.constant 0 : index
      %14 = vector.load %arg3[%c0, %c0_4, %c0_5] : memref<1x1x8xi32, #tpu.memory_space<vmem>>, vector<1x1x8xi32>
      %15 = vector.shape_cast %14 : vector<1x1x8xi32> to vector<8xi32>
      %c0_i32_6 = arith.constant 0 : i32
      %16 = vector.broadcast %c0_i32_6 : i32 to vector<8xi32>
      %17 = arith.cmpi eq, %15, %16 : vector<8xi32>
      %18 = vector.shape_cast %17 : vector<8xi1> to vector<1x8xi1>
      %19 = vector.shape_cast %18 : vector<1x8xi1> to vector<1x8xi1>
      %20 = vector.broadcast %19 : vector<1x8xi1> to vector<8x8xi1>
      %21 = arith.extui %20 : vector<8x8xi1> to vector<8x8xi8>
      %c0_7 = arith.constant 0 : index
      %c0_8 = arith.constant 0 : index
      %c0_9 = arith.constant 0 : index
      %c0_10 = arith.constant 0 : index
      %22 = vector.load %arg4[%c0_7, %c0_8, %c0_9, %c0_10] : memref<1x1x8x8xi8, #tpu.memory_space<vmem>>, vector<1x1x8x8xi8>
      %23 = vector.shape_cast %22 : vector<1x1x8x8xi8> to vector<8x8xi8>
      %24 = vector.shape_cast %21 : vector<8x8xi8> to vector<1x1x8x8xi8>
      tpu.vector_store %arg4[%c0_7, %c0_8, %c0_9, %c0_10], %24 {strides = array<i32>} : memref<1x1x8x8xi8, #tpu.memory_space<vmem>>, vector<1x1x8x8xi8>,
    } else {
    }
    %10 = arith.ori %3, %5 : i1
    %true = arith.constant true
    %11 = arith.xori %10, %true : i1
    %12 = arith.extui %11 : i1 to i32
    %c0_i32_3 = arith.constant 0 : i32
    %13 = arith.cmpi ne, %12, %c0_i32_3 : i32
    scf.if %13 {
      %14 = tpu.iota {dimensions = array<i32: 0>} : vector<8x8xi32>
      %15 = vector.broadcast %0 : i32 to vector<8x8xi32>
      %16 = arith.addi %15, %14 : vector<8x8xi32>
      %17 = tpu.iota {dimensions = array<i32: 1>} : vector<8x8xi32>
      %18 = vector.broadcast %1 : i32 to vector<8x8xi32>
      %19 = arith.addi %18, %17 : vector<8x8xi32>
      %20 = arith.cmpi sgt, %19, %16 : vector<8x8xi32>
      %c0 = arith.constant 0 : index
      %c0_4 = arith.constant 0 : index
      %c0_5 = arith.constant 0 : index
      %21 = vector.load %arg3[%c0, %c0_4, %c0_5] : memref<1x1x8xi32, #tpu.memory_space<vmem>>, vector<1x1x8xi32>
      %22 = vector.shape_cast %21 : vector<1x1x8xi32> to vector<8xi32>
      %c0_i32_6 = arith.constant 0 : i32
      %23 = vector.broadcast %c0_i32_6 : i32 to vector<8xi32>
      %24 = arith.cmpi eq, %22, %23 : vector<8xi32>
      %25 = vector.shape_cast %24 : vector<8xi1> to vector<1x8xi1>
      %26 = vector.shape_cast %25 : vector<1x8xi1> to vector<1x8xi1>
      %27 = vector.broadcast %26 : vector<1x8xi1> to vector<8x8xi1>
      %28 = arith.ori %20, %27 : vector<8x8xi1>
      %29 = arith.extui %28 : vector<8x8xi1> to vector<8x8xi8>
      %c0_7 = arith.constant 0 : index
      %c0_8 = arith.constant 0 : index
      %c0_9 = arith.constant 0 : index
      %c0_10 = arith.constant 0 : index
      %30 = vector.load %arg4[%c0_7, %c0_8, %c0_9, %c0_10] : memref<1x1x8x8xi8, #tpu.memory_space<vmem>>, vector<1x1x8x8xi8>
      %31 = vector.shape_cast %30 : vector<1x1x8x8xi8> to vector<8x8xi8>
      %32 = vector.shape_cast %29 : vector<8x8xi8> to vector<1x1x8x8xi8>
      tpu.vector_store %arg4[%c0_7, %c0_8, %c0_9, %c0_10], %32 {strides = array<i32>} : memref<1x1x8x8xi8, #tpu.memory_space<vmem>>, vector<1x1x8x8xi8>,
    } else {
    }
    return
  }
  func.func @transform_0(%arg0: i32, %arg1: i32, %arg2: i32) -> (i32, i32, i32) {
    %c0_i32 = arith.constant 0 : i32
    %c0_i32_0 = arith.constant 0 : i32
    return %arg0, %c0_i32, %arg2 : i32, i32, i32
  }
  func.func @transform_1(%arg0: i32, %arg1: i32, %arg2: i32) -> (i32, i32, i32, i32) {
    %c0_i32 = arith.constant 0 : i32
    %c0_i32_0 = arith.constant 0 : i32
    return %arg0, %c0_i32, %arg1, %arg2 : i32, i32, i32, i32
  }
}

</mosaic_0001>

<bundles_post_ra>
// kernel: tpu_custom_call.1
= control target key start
LH: loop header
LB: loop body
LE: loop exit
PB: predicated region body
PF: predicated region fallthrough
CT: control target
= control target key end

     0   :  { %6 = vsyncpa [#allocation3], 0  ;;  %s582_s0 = inlined_call_operand.hbm [shape: s32[2,1,8], index: 0, kind: input, shape index: {}]   ;;  %s583_s1 = inlined_call_operand.vmem [shape: s32[2,1,8,8], index: 1, kind: output, shape index: {}]  }
   0x1   :  { %8 = vsyncpa [#allocation3 + $0x1], 0  ;;  %s494_s6 = smov 0   ;;  %s496_s7 = smov 0  }
   0x2   :  { %s498_s8 = smov 0   ;;  %s500_s9 = smov 0  }
   0x3   :  { %s502_s10 = smov 0   ;;  %s504_s11 = smov 0  }
   0x4 LB: > { %s337_s12 = sadd.s32 4294967295, %s481_s11   ;;  %s33_s13 = sadd.s32 1, %s477_s10  ;;  %s481_s11 = sphi %s504_s11, %s14_s11   ;;  %s477_s10 = sphi %s502_s10, %s590_s10   ;;  %s473_s9 = sphi %s500_s9, %s589_s9   ;;  %s469_s8 = sphi %s498_s8, %s588_s8   ;;  %s465_s7 = sphi %s496_s7, %s587_s7   ;;  %s461_s6 = sphi %s494_s6, %s586_s6  }
   0x5   : > { %p35_p0 = scmp.ge.s32.totalorder %s33_s13, 2  ;;  %s42_s14 = sadd.s32 1, %s469_s8 }
   0x6   : > { %p49_p1 = scmp.ne.s32.totalorder %s469_s8, %s465_s7  ;;  %p50_p2 = scmp.eq.s32.totalorder %s481_s11, 0 }
   0x7   : > { %s592_s13 = smov (%p35_p0, %s33_s13), 0  ;;  %p55_p4 = scmp.ne.s32.totalorder %s465_s7, %s461_s6 }
   0x8   : > { %p530_p3 = por %p50_p2, %p49_p1  ;;  %s37_s16 = ssub.s32 %s477_s10, %s592_s13 }
   0x9   : > { %p56_p5 = scmp.eq.s32.totalorder %s337_s12, 0  ;;  %p40_p6 = scmp.eq.s32.totalorder %s37_s16, 0 }
   0xa   : > { %p351_p8 = scmp.lt.s32.totalorder %s481_s11, 2  ;;  %s109_s19 = sand.u32 1, %s469_s8  }
   0xb   : > { %p537_p7 = por %p56_p5, %p55_p4  ;;  %s116_s22 = scalar_lea.hbm %s582_s0, %s477_s10 }
   0xc   : > { %s543_s18 = scalar_select %p40_p6, %s469_s8, %s42_s14  }
   0xd   : > { %s118_s23 = sshll.u32 %s116_s22, 4  ;;  %s112_s24 = scalar_lea.vmem [#allocation2], %s109_s19  ;;  %s119_s23 = int_to_ptr.hbm [resolvable:$true] %s118_s23 }
   0xe   : > { %s120_s25 = sshll.u32 %s112_s24, 4  ;;  %p348_p9 = pnand %p351_p8, %p530_p3  ;;  %s121_s25 = int_to_ptr.vmem [resolvable:$true] %s120_s25 }
   0xf   : > { %p341_p10 = scmp.ge.s32.totalorder %s481_s11, 1  ;;  %p125_p11 = scmp.lt.s32.totalorder %s481_s11, 3 }
  0x10   : > { %s110_s26 = scalar_lea.sflag [#allocation3], %s109_s19 }
  0x11   : > { %350 = dma.hbm_to_vmem [thread:$0]  (!%p348_p9), %s119_s23, 16, %s121_s25, %s110_s26  }
  0x12   : > { %p126_p12 = pnand %p341_p10, %p125_p11 }
  0x13   : > { %s131_s27 = sand.u32 (!%p126_p12), 1, %s465_s7  }
  0x14   : > { %129 = sbr.rel (%p126_p12) target bundleno = 48 (0x30), region = 24  ;;  %s132_s28 = scalar_lea.sflag (!%p126_p12), [#allocation3], %s131_s27 }
  0x15   : > { %s134_s29 = scalar_lea.vmem (!%p126_p12), [#allocation2], %s131_s27 }
  0x19   : > { %456 = dma.done.wait (%p537_p7), %s132_s28, 16  }
  0x1a   : > { %458 = vsyncadd (%p537_p7), %s132_s28, 4294967280  ;;  %v218_v0 = vld [vmem:[%s134_s29] sm:$0x1]  ;;  %v483_v1 = vmov 0   ;;  %p158_p13 = scmp.lt.s32.totalorder %s473_s9, 1  ;;  %v209_v3 = vlaneseq  ;;  %vm242_vm3 = vcmask 64512  }
  0x1b   : > { %vm219_vm0 = vcmp.eq.s32.totalorder %v218_v0, 0 }
  0x1c   : > { %v222_v2 = vsel %vm219_vm0, 1, %v483_v1  ;;  %s594_s9 = smov (!%p158_p13, %s473_s9), 1  ;;  %v210_v4 = vshrl.u32 %v209_v3, 7  ;;  %v214_v5 = vand.u32 127, %v209_v3 }
  0x1d   : > { %223 = vst [vmem:[#allocation1] ss:$9 sm:$0xff] %v222_v2  ;;  %s342_s30 = sshll.u32 %s594_s9, 3 }
  0x1e   : > { %225 = vst [vmem:[#allocation1 + $0x1] ss:$9 sm:$0xff] %v222_v2  ;;  %vm217_vm1 = vcmp.gt.s32.totalorder %v214_v5, %v210_v4  ;;  %s167_s4 = scalar_lea.vmem %s583_s1, %s342_s30 }
  0x1f   : > { %227 = vst [vmem:[#allocation1 + $0x2] ss:$9 sm:$0xff] %v222_v2 }
  0x20   : > { %229 = vst [vmem:[#allocation1 + $0x3] ss:$9 sm:$0xff] %v222_v2 }
  0x21   : > { %231 = vst [vmem:[#allocation1 + $0x4] ss:$9 sm:$0xff] %v222_v2 }
  0x22   : > { %233 = vst [vmem:[#allocation1 + $0x5] ss:$9 sm:$0xff] %v222_v2 }
  0x23   : > { %235 = vst [vmem:[#allocation1 + $0x6] ss:$9 sm:$0xff] %v222_v2 }
  0x24   : > { %237 = vst [vmem:[#allocation1 + $0x7] ss:$9 sm:$0xff] %v222_v2 }
  0x2b   : > { %v238_v6 = vld [vmem:[#allocation1] sm:$0xff] }
  0x2c   : > { %vm239_vm2 = vcmp.ne.s32.totalorder %v238_v6, 0 }
  0x2d   : > { %vm240_vm4 = vmor %vm217_vm1, %vm239_vm2 }
  0x2e   : > { %v241_v7 = vsel %vm240_vm4, 1, %v483_v1 }
  0x2f   : > { %243 = vst.msk [vmem:[%s167_s4] sm:$0xff] %vm242_vm3, %v241_v7 }
  0x30 PF: > { %s14_s11 = sadd.s32 1, %s481_s11   ;;  %s586_s6 = smov %s465_s7 }
  0x31   : > { %p11_p0 = scmp.ge.s32.totalorder %s14_s11, 4   ;;  %s587_s7 = smov %s469_s8 }
  0x32   : > { %s588_s8 = smov %s543_s18  ;;  %s589_s9 = smov %s477_s10 }
  0x33   : > { %s590_s10 = smov %s592_s13  ;;  %13 = sbr.rel (!%p11_p0) target bundleno = 4 (0x4), region = 90 }
  0x38   :  { %275 = vsyncpa [#allocation3], 1 }
  0x39   :  { %277 = vsyncpa [#allocation3 + $0x1], 1 }

// kernel: tpu_custom_call.1
= control target key start
LH: loop header
LB: loop body
LE: loop exit
PB: predicated region body
PF: predicated region fallthrough
CT: control target
= control target key end

     0   :  { %6 = vsyncpa [#allocation3], 0  ;;  %s678_s0 = inlined_call_operand.hbm [shape: s32[2,1,8], index: 0, kind: input, shape index: {}]   ;;  %s679_s1 = inlined_call_operand.hbm [shape: u8[2,1,8,8], index: 1, kind: output, shape index: {}]  }
   0x1   :  { %8 = vsyncpa [#allocation3 + $0x1], 0 }
   0x2   :  { %9 = vsyncpa [#allocation4], 0 }
   0x3   :  { %11 = vsyncpa [#allocation4 + $0x1], 0  ;;  %s557_s6 = smov 0   ;;  %s559_s7 = smov 0  }
   0x4   :  { %s561_s8 = smov 0   ;;  %s563_s9 = smov 0  }
   0x5   :  { %s565_s10 = smov 0   ;;  %s567_s11 = smov 0  }
   0x6 LB: > { %s359_s12 = sadd.s32 4294967295, %s544_s11   ;;  %s360_s13 = sadd.s32 4294967294, %s544_s11   ;;  %s544_s11 = sphi %s567_s11, %s17_s11   ;;  %s540_s10 = sphi %s565_s10, %s688_s10   ;;  %s536_s9 = sphi %s563_s9, %s687_s9   ;;  %s532_s8 = sphi %s561_s8, %s686_s8   ;;  %s528_s7 = sphi %s559_s7, %s685_s7   ;;  %s524_s6 = sphi %s557_s6, %s684_s6  }
   0x7   : > { %s36_s14 = sadd.s32 1, %s540_s10  ;;  %s45_s15 = sadd.s32 1, %s532_s8 }
   0x8   : > { %p38_p0 = scmp.ge.s32.totalorder %s36_s14, 2  ;;  %p52_p1 = scmp.ne.s32.totalorder %s532_s8, %s528_s7 }
   0x9   : > { %p53_p2 = scmp.eq.s32.totalorder %s544_s11, 0  ;;  %p58_p3 = scmp.ne.s32.totalorder %s528_s7, %s524_s6 }
   0xa   : > { %s690_s14 = smov (%p38_p0, %s36_s14), 0  ;;  %p59_p5 = scmp.eq.s32.totalorder %s359_s12, 0 }
   0xb   : > { %p598_p4 = por %p53_p2, %p52_p1  ;;  %s40_s17 = ssub.s32 %s540_s10, %s690_s14 }
   0xc   : > { %p86_p6 = scmp.eq.s32.totalorder %s359_s12, 1  ;;  %p43_p7 = scmp.eq.s32.totalorder %s40_s17, 0 }
   0xd   : > { %p604_p8 = por %p59_p5, %p58_p3  ;;  %p92_p10 = scmp.eq.s32.totalorder %s360_s13, 1 }
   0xe   : > { %p608_p9 = por %p86_p6, %p52_p1  ;;  %p362_p12 = scmp.ge.s32.totalorder %s544_s11, 2 }
   0xf   : > { %s613_s20 = scalar_select %p43_p7, %s532_s8, %s45_s15  }
  0x10   : > { %p615_p11 = por %p92_p10, %p58_p3  ;;  %p381_p13 = scmp.lt.s32.totalorder %s544_s11, 2 }
  0x11   : > { %s112_s22 = sand.u32 1, %s532_s8   ;;  %s119_s25 = scalar_lea.hbm %s678_s0, %s540_s10 }
  0x12   : > { %s115_s26 = scalar_lea.vmem [#allocation2], %s112_s22  ;;  %s121_s28 = sshll.u32 %s119_s25, 4  ;;  %s122_s28 = int_to_ptr.hbm [resolvable:$true] %s121_s28 }
  0x13   : > { %s123_s27 = sshll.u32 %s115_s26, 4  ;;  %p374_p0 = pnand %p381_p13, %p598_p4  ;;  %s124_s27 = int_to_ptr.vmem [resolvable:$true] %s123_s27 }
  0x14   : > { %p363_p1 = scmp.ge.s32.totalorder %s544_s11, 1  ;;  %p128_p2 = scmp.lt.s32.totalorder %s544_s11, 3 }
  0x15   : > { %s113_s29 = scalar_lea.sflag [#allocation3], %s112_s22 }
  0x16   : > { %376 = dma.hbm_to_vmem [thread:$0]  (!%p374_p0), %s122_s28, 16, %s124_s27, %s113_s29  }
  0x17   : > { %p129_p3 = pnand %p363_p1, %p128_p2 }
  0x18   : > { %s631_s30 = sand.u32 (!%p129_p3), 1, %s528_s7  }
  0x19   : > { %132 = sbr.rel (%p129_p3) target bundleno = 60 (0x3c), region = 24  ;;  %s135_s2 = scalar_lea.sflag (!%p129_p3), [#allocation3], %s631_s30 }
  0x1a   : > { %s137_s3 = scalar_lea.vmem (!%p129_p3), [#allocation2], %s631_s30 }
  0x1e   : > { %515 = dma.done.wait (%p604_p8), %s135_s2, 16  }
  0x1f   : > { %517 = vsyncadd (%p604_p8), %s135_s2, 4294967280  ;;  %v230_v0 = vld [vmem:[%s137_s3] sm:$0x1]  ;;  %v546_v1 = vmov 0   ;;  %v221_v3 = vlaneseq  ;;  %s364_s4 = sshll.u32 %s631_s30, 1  ;;  %s366_s5 = sshll.u32 %s536_s9, 1 }
  0x20   : > { %vm231_vm0 = vcmp.eq.s32.totalorder %v230_v0, 0  ;;  %s274_s15 = scalar_lea.hbm %s679_s1, %s366_s5  ;;  %s155_s16 = scalar_lea.vmem [#allocation5], %s364_s4  ;;  %vm259_vm5 = vcmask 58368  }
  0x21   : > { %v234_v2 = vsel %vm231_vm0, 1, %v546_v1  ;;  %v222_v4 = vshrl.u32 %v221_v3, 7  ;;  %v226_v5 = vand.u32 127, %v221_v3  ;;  %s276_s17 = sshll.u32 %s155_s16, 4  ;;  %s278_s18 = sshll.u32 %s274_s15, 4  ;;  %s277_s17 = int_to_ptr.vmem [resolvable:$true] %s276_s17  ;;  %s279_s18 = int_to_ptr.hbm [resolvable:$true] %s278_s18 }
  0x22   : > { %235 = vst [vmem:[#allocation1] ss:$9 sm:$0xff] %v234_v2  ;;  %s262_s9 = scalar_lea.sflag [#allocation4], %s631_s30  ;;  %s476_s22 = sshra.s32 %s279_s18, 4  ;;  %s477_s22 = int_to_ptr.hbm [resolvable:$true] %s476_s22 }
  0x23   : > { %237 = vst [vmem:[#allocation1 + $0x1] ss:$9 sm:$0xff] %v234_v2  ;;  %vm229_vm1 = vcmp.gt.s32.totalorder %v226_v5, %v222_v4  ;;  %s478_s23 = scalar_lea.hbm %s477_s22, 2  ;;  %s482_s26 = scalar_lea.hbm %s679_s1, 4 }
  0x24   : > { %239 = vst [vmem:[#allocation1 + $0x2] ss:$9 sm:$0xff] %v234_v2  ;;  %p479_p4 = scmp.ne.s32.totalorder %s477_s22, %s478_s23  ;;  %p483_p7 = scmp.lt.s32.totalorder %s477_s22, %s679_s1 }
  0x25   : > { %241 = vst [vmem:[#allocation1 + $0x3] ss:$9 sm:$0xff] %v234_v2  ;;  %p484_p8 = scmp.lt.s32.totalorder %s482_s26, %s478_s23 }
  0x26   : > { %243 = vst [vmem:[#allocation1 + $0x4] ss:$9 sm:$0xff] %v234_v2  ;;  %p480_p5 = pnand %p479_p4, %p608_p9 }
  0x27   : > { %245 = vst [vmem:[#allocation1 + $0x5] ss:$9 sm:$0xff] %v234_v2  ;;  %p485_p10 = por %p484_p8, %p483_p7 }
  0x28   : > { %247 = vst [vmem:[#allocation1 + $0x6] ss:$9 sm:$0xff] %v234_v2  ;;  %p481_p6 = pneg %p480_p5 }
  0x29   : > { %249 = vst [vmem:[#allocation1 + $0x7] ss:$9 sm:$0xff] %v234_v2 }
  0x2a   : > { %p486_p13 = pnand %p485_p10, %p481_p6 }
  0x30   : > { %v250_v6 = vld [vmem:[#allocation1] sm:$0xff] }
  0x31   : > { %vm251_vm2 = vcmp.ne.s32.totalorder %v250_v6, 0 }
  0x32   : > { %vm252_vm3 = vmor %vm229_vm1, %vm251_vm2 }
  0x33   : > { %vm253_vm4 = vmpackc.low %vm252_vm3, %vm252_vm3 }
  0x34   : > { %v254_v7 = vsel %vm253_vm4, 16711935, %v546_v1 }
  0x35   : > { %v256_v8 = vpack.c.b8 %v254_v7, %v254_v7 }
  0x37   : > { %vm257_vm6 = vnez %v256_v8 }
  0x38   : > { %v258_v9 = vsel %vm257_vm6, 16843009, %v546_v1 }
  0x39   : > { %260 = vst.msk [vmem:[%s155_s16] sm:$0x3] %vm259_vm5, %v258_v9 }
  0x3a   : > { %489 = shalt.err (!%p486_p13)
}
  0x3b   : > { %371 = dma.vmem_to_hbm [thread:$0]  (%p608_p9), %s277_s17, 32, %s279_s18, %s262_s9  }
  0x3c PF: > { %s290_s29 = sand.u32 1, %s524_s6   ;;  %p378_p0 = pnand %p362_p12, %p615_p11 }
  0x3d   : > { %s291_s30 = scalar_lea.sflag [#allocation4], %s290_s29 }
  0x3e   : > { %p379_p1 = pneg %p378_p0 }
  0x40   : > { %519 = dma.done.wait (%p379_p1), %s291_s30, 32  }
  0x41   : > { %521 = vsyncadd (%p379_p1), %s291_s30, 4294967264  ;;  %s17_s11 = sadd.s32 1, %s544_s11   ;;  %s684_s6 = smov %s528_s7 }
  0x42   : > { %p14_p2 = scmp.ge.s32.totalorder %s17_s11, 4   ;;  %s685_s7 = smov %s532_s8 }
  0x43   : > { %s686_s8 = smov %s613_s20  ;;  %s687_s9 = smov %s540_s10 }
  0x44   : > { %s688_s10 = smov %s690_s14  ;;  %16 = sbr.rel (!%p14_p2) target bundleno = 6 (0x6), region = 96 }
  0x49   :  { %297 = vsyncpa [#allocation3], 1 }
  0x4a   :  { %299 = vsyncpa [#allocation3 + $0x1], 1 }
  0x4b   :  { %300 = vsyncpa [#allocation4], 1 }
  0x4c   :  { %302 = vsyncpa [#allocation4 + $0x1], 1 }

</bundles_post_ra>
